<compile_context>
chip_gen: v7x
topology: tpu7x:2x2x1
jax: 0.10.0
libtpu: 0.0.40
codegen_flags: <defaults>
</compile_context>

<pallas_src>
import functools

import jax
import jax.numpy as jnp
from jax import lax
from jax.experimental import pallas as pl
from jax.experimental.pallas import tpu as pltpu


_LANE = 128
_X_TILE_BYTE_TARGET = 32 * 1024 * 1024   # ~32 MiB of x per grid step
_DEFAULT_VMEM_CAP = 64 * 1024 * 1024     # conservative fallback (v7x per-TC)


def _vmem_capacity_bytes():
    """Generation-aware physical VMEM size (128 MiB v5e/v6e, 64 MiB v7x)."""
    try:
        cap = getattr(pltpu.get_tpu_info(), "vmem_capacity_bytes", None)
        if cap:
            return int(cap)
    except Exception:
        pass
    return _DEFAULT_VMEM_CAP


def _round_up(n, m):
    return ((n + m - 1) // m) * m


def _choose_tile_b(batch, n_features, itemsize, vmem_cap):
    """Largest lane-aligned batch tile sized by bytes, fitting the VMEM budget."""
    row_bytes = max(1, n_features * itemsize)
    # 2 in-flight (double-buffered) x tiles within ~60% of physical VMEM
    # (rest: resident weight row, lane-dense output block, compiler scratch).
    vmem_rows = int(vmem_cap * 0.6) // (2 * row_bytes)
    # Byte target, not row target: ~32 MiB per step amortizes the ~0.35us
    # per-grid-step overhead on every generation (v5e/v6e/v7x).
    target_rows = _X_TILE_BYTE_TARGET // row_bytes
    tile_b = min(vmem_rows, target_rows)
    # Keep >= 2 grid steps for non-tiny batches so v7x's second TensorCore
    # gets work under dimension_semantics=("parallel",).
    if batch >= 2 * _LANE:
        tile_b = min(tile_b, pl.cdiv(batch, 2))
    # Never allocate a tile (much) larger than the batch itself.
    tile_b = min(tile_b, _round_up(batch, _LANE))
    # Lane-dense, (8,128)-aligned tiles: multiple of 128. (Pathological
    # n_features > ~40K could exceed the VMEM budget here; irrelevant for this
    # model.)
    tile_b = max(_LANE, (tile_b // _LANE) * _LANE)
    return tile_b


def _linear_kernel(x_ref, w_ref, b_ref, o_ref, *, apply_sigmoid):
    # x_ref: (tile_b, F) VMEM (streamed);  w_ref: (1, F) VMEM (resident);
    # b_ref: (1,) SMEM scalar;            o_ref: (1, tile_b) VMEM (lane-dense).
    #
    # MXU dot contracting the feature axis of both operands (no transpose):
    #   (1, F) . (tile_b, F) -> (1, tile_b), f32 accumulation.
    acc = lax.dot_general(
        w_ref[...], x_ref[...],
        dimension_numbers=(((1,), (1,)), ((), ())),
        preferred_element_type=jnp.float32,
    )
    z = acc + b_ref[0]                      # scalar bias from SMEM
    if apply_sigmoid:
        # EUP transcendental; essentially free in this memory-bound kernel.
        # exp overflow for very negative z saturates to the correct limit 0.0.
        z = 1.0 / (1.0 + jnp.exp(-z))
    o_ref[...] = z.astype(o_ref.dtype)


def logistic_regression_forward(x, weight, bias, *, tile_b=None,
                                apply_sigmoid=False, out_dtype=jnp.float32):
    """Forward pass of LogisticRegression (y = x @ W^T + b).

    Args:
      x:      (batch, n_features)  float32 or bfloat16 (f32 accumulation either way)
      weight: (1, n_features)      PyTorch Linear layout (used as-is, no transpose)
      bias:   (1,)
      tile_b: optional batch-tile override (auto-sized from VMEM budget if None)
      apply_sigmoid: fuse a sigmoid epilogue (default False == module semantics)
      out_dtype: output dtype (float32 by default, matching the f32 reference)

    Returns:
      (batch, 1) array of logits, same semantics as the PyTorch module.
    """
    batch, n_features = x.shape
    assert weight.shape == (1, n_features), weight.shape

    vmem_cap = _vmem_capacity_bytes()
    if tile_b is None:
        tile_b = _choose_tile_b(batch, n_features, x.dtype.itemsize, vmem_cap)
    else:
        tile_b = max(_LANE, _round_up(int(tile_b), _LANE))
        tile_b = min(tile_b, _round_up(batch, _LANE))

    grid_steps = pl.cdiv(batch, tile_b)
    padded = grid_steps * tile_b           # lane-dense padded output length

    w = weight.astype(x.dtype)             # bf16 x streams against bf16 weights
    b = bias.reshape(1).astype(jnp.float32)

    kernel = functools.partial(_linear_kernel, apply_sigmoid=apply_sigmoid)

    out = pl.pallas_call(
        kernel,
        out_shape=jax.ShapeDtypeStruct((1, padded), out_dtype),
        grid_spec=pl.GridSpec(
            grid=(grid_steps,),
            in_specs=[
                # Stream x tiles along the batch axis (double-buffered by Pallas).
                pl.BlockSpec((tile_b, n_features), lambda i: (i, 0)),
                # Weight row stays resident across the whole grid.
                pl.BlockSpec((1, n_features), lambda i: (0, 0)),
                # Bias as an SMEM scalar: no padded VMEM tile, no per-step DMA.
                pl.BlockSpec(memory_space=pltpu.MemorySpace.SMEM),
            ],
            # Lane-dense output: (1, tile_b) slices of one (1, padded) row.
            out_specs=pl.BlockSpec((1, tile_b), lambda i: (0, i)),
        ),
        compiler_params=pltpu.CompilerParams(
            # Batch tiles are independent -> shard across TensorCores on v7x.
            dimension_semantics=("parallel",),
            # Generation-aware scoped-VMEM limit (v5e default is only 16 MiB).
            vmem_limit_bytes=int(vmem_cap * 0.85),
        ),
    )(x, w, b)

    # Drop ragged padding (garbage computed on padded rows is never read) and
    # restore the module's (batch, 1) shape.
    return out[0, :batch].reshape(batch, 1)


def compute_l2_loss(w):
    # Pure-JAX glue equivalent of the module's compute_l2_loss (trivial reduction).
    return jnp.square(w).sum()


if __name__ == "__main__":
    key = jax.random.PRNGKey(0)
    k_x, k_w, k_b = jax.random.split(key, 3)

    batch = 300            # ragged vs. the lane-aligned tile (300 = 2*128 + 44)
    n_features = 128

    # Deterministic synthetic parameters (PyTorch Linear-style uniform init).
    bound = 1.0 / float(n_features) ** 0.5
    x = jax.random.normal(k_x, (batch, n_features), dtype=jnp.float32)
    weight = jax.random.uniform(
        k_w, (1, n_features), minval=-bound, maxval=bound, dtype=jnp.float32
    )
    bias = jax.random.uniform(
        k_b, (1,), minval=-bound, maxval=bound, dtype=jnp.float32
    )

    ref = x @ weight.T + bias   # (batch, 1) float32 reference

    # 1) Auto tile size (multi-step lane-aligned grid, ragged last tile).
    y_auto = jax.block_until_ready(logistic_regression_forward(x, weight, bias))
    assert y_auto.shape == (batch, 1) and y_auto.dtype == jnp.float32
    assert jnp.allclose(y_auto, ref, atol=1e-5, rtol=1e-5)

    # 2) Forced tile: explicit 128-row tiles -> 3 grid steps.
    y_tiled = jax.block_until_ready(
        logistic_regression_forward(x, weight, bias, tile_b=128)
    )
    assert jnp.allclose(y_tiled, ref, atol=1e-5, rtol=1e-5)

    # 3) bf16 streaming path (half the HBM bytes), f32 accumulation + output.
    y_bf16 = jax.block_until_ready(
        logistic_regression_forward(x.astype(jnp.bfloat16), weight, bias)
    )
    assert y_bf16.dtype == jnp.float32
    assert jnp.allclose(y_bf16, ref, atol=3e-2, rtol=3e-2)

    # 4) Fused-sigmoid epilogue (opt-in; default path keeps the raw logits).
    y_sig = jax.block_until_ready(
        logistic_regression_forward(x, weight, bias, tile_b=128, apply_sigmoid=True)
    )
    assert jnp.allclose(y_sig, jax.nn.sigmoid(ref), atol=1e-5, rtol=1e-5)

    # l2 helper sanity check.
    _ = jax.block_until_ready(compute_l2_loss(weight))

    print("KERNEL_OK")
</pallas_src>

<mosaic_0001>
module attributes {stable_mosaic.version = 11 : i64} {
  func.func @_linear_kernel(%arg0: i32, %arg1: memref<128x128xf32, #tpu.memory_space<vmem>>, %arg2: memref<1x128xf32, #tpu.memory_space<vmem>>, %arg3: memref<1xf32, #tpu.memory_space<smem>>, %arg4: memref<1x128xf32, #tpu.memory_space<vmem>>) attributes {dimension_semantics = [#tpu.dimension_semantics<parallel>], iteration_bounds = array<i64: 3>, scalar_prefetch = 0 : i64, scratch_operands = 0 : i64, tpu.core_type = #tpu.core_type<tc>, window_params = [{transform_indices = @transform_0, window_bounds = array<i64: 128, 128>}, {pipeline_mode = #tpu.pipeline_mode<synchronous>, transform_indices = @transform_1, window_bounds = array<i64: 1, 128>}, {transform_indices = @transform_2, window_bounds = array<i64: 1>}, {transform_indices = @transform_3, window_bounds = array<i64: 1, 128>}]} {
    %c0 = arith.constant 0 : index
    %c0_0 = arith.constant 0 : index
    %0 = vector.load %arg2[%c0, %c0_0] : memref<1x128xf32, #tpu.memory_space<vmem>>, vector<1x128xf32>
    %c0_1 = arith.constant 0 : index
    %c0_2 = arith.constant 0 : index
    %1 = vector.load %arg1[%c0_1, %c0_2] : memref<128x128xf32, #tpu.memory_space<vmem>>, vector<128x128xf32>
    %cst = arith.constant dense<0.000000e+00> : vector<1x128xf32>
    %2 = tpu.matmul %0, %1, %cst {dimension_numbers = #tpu.dot_dimension_numbers<[1], [1], [0], [0], [0, 0, 1, 0], [], []>} : vector<1x128xf32>, vector<128x128xf32>, vector<1x128xf32> -> vector<1x128xf32>
    %c0_3 = arith.constant 0 : index
    %3 = memref.load %arg3[%c0_3] : memref<1xf32, #tpu.memory_space<smem>>
    %4 = vector.broadcast %3 : f32 to vector<1x128xf32>
    %5 = arith.addf %2, %4 : vector<1x128xf32>
    %c0_4 = arith.constant 0 : index
    %c0_5 = arith.constant 0 : index
    %6 = vector.load %arg4[%c0_4, %c0_5] : memref<1x128xf32, #tpu.memory_space<vmem>>, vector<1x128xf32>
    tpu.vector_store %arg4[%c0_4, %c0_5], %5 {strides = array<i32>} : memref<1x128xf32, #tpu.memory_space<vmem>>, vector<1x128xf32>,
    return
  }
  func.func @transform_0(%arg0: i32) -> (i32, i32) {
    %c0_i32 = arith.constant 0 : i32
    %c0_i32_0 = arith.constant 0 : i32
    return %arg0, %c0_i32 : i32, i32
  }
  func.func @transform_1(%arg0: i32) -> (i32, i32) {
    %c0_i32 = arith.constant 0 : i32
    %c0_i32_0 = arith.constant 0 : i32
    %c0_i32_1 = arith.constant 0 : i32
    return %c0_i32, %c0_i32_0 : i32, i32
  }
  func.func @transform_2(%arg0: i32) -> i32 {
    %c0_i32 = arith.constant 0 : i32
    %c0_i32_0 = arith.constant 0 : i32
    return %c0_i32 : i32
  }
  func.func @transform_3(%arg0: i32) -> (i32, i32) {
    %c0_i32 = arith.constant 0 : i32
    %c0_i32_0 = arith.constant 0 : i32
    return %c0_i32, %arg0 : i32, i32
  }
}

</mosaic_0001>

<bundles_post_ra>
// kernel: tpu_custom_call.1
= control target key start
LH: loop header
LB: loop body
LE: loop exit
PB: predicated region body
PF: predicated region fallthrough
CT: control target
= control target key end

     0   :  { %s807_s0 = inlined_call_operand.hbm [shape: f32[300,128], index: 0, kind: input, shape index: {}]   ;;  %s808_s1 = inlined_call_operand.vmem [shape: f32[1,128], index: 1, kind: input, shape index: {}]   ;;  %s809_s2 = inlined_call_operand.<no memory space> [shape: f32[1], index: 2, kind: input, shape index: {}]   ;;  %s810_s3 = inlined_call_operand.hbm [shape: f32[1,384], index: 3, kind: output, shape index: {}]  }
   0x1   :  { %8 = sst [smem:[#allocation2]] %s809_s2 }
   0x2   :  { %9 = vsyncpa [#allocation4], 0 }
   0x3   :  { %11 = vsyncpa [#allocation4 + $0x1], 0 }
   0x4   :  { %12 = vsyncpa [#allocation5], 0 }
   0x5   :  { %14 = vsyncpa [#allocation5 + $0x1], 0  ;;  %s632_s14 = smov 0   ;;  %s634_s15 = smov 0  }
   0x6   :  { %s636_s16 = smov 0   ;;  %s638_s17 = smov 0  }
   0x7 LB: > { %s653_s2 = sadd.s32 4294967295, %s600_s17   ;;  %s369_s18 = sadd.s32 4294967294, %s600_s17   ;;  %s600_s17 = sphi %s638_s17, %s818_s17   ;;  %s596_s16 = sphi %s636_s16, %s817_s16   ;;  %s592_s15 = sphi %s634_s15, %s816_s15   ;;  %s588_s14 = sphi %s632_s14, %s815_s14  }
   0x8   : > { %s657_s19 = sadd.s32 1, %s600_s17   ;;  %s27_s20 = sadd.s32 1, %s596_s16 }
   0x9   : > { %s24_s21 = ssub.s32 %s600_s17, %s657_s19  ;;  %p34_p0 = scmp.ne.s32.totalorder %s596_s16, %s592_s15 }
   0xa   : > { %p25_p1 = scmp.eq.s32.totalorder %s24_s21, 0  ;;  %p35_p2 = scmp.eq.s32.totalorder %s600_s17, 0 }
   0xb   : > { %p40_p3 = scmp.ne.s32.totalorder %s592_s15, %s588_s14  ;;  %p41_p4 = scmp.eq.s32.totalorder %s653_s2, 0 }
   0xc   : > { %s669_s22 = scalar_select %p25_p1, %s596_s16, %s27_s20  }
   0xd   : > { %p36_p5 = por %p35_p2, %p34_p0  ;;  %p671_p6 = por %p41_p4, %p40_p3 }
   0xe   : > { %p106_p7 = scmp.eq.s32.totalorder %s653_s2, 2  ;;  %p112_p8 = scmp.eq.s32.totalorder %s369_s18, 2 }
   0xf   : > { %p371_p11 = scmp.ge.s32.totalorder %s600_s17, 3 }
  0x10   : > { %p676_p9 = por %p106_p7, %p34_p0  ;;  %p680_p10 = por %p112_p8, %p40_p3 }
  0x11   : > { %134 = sbr.rel (%p371_p11) target bundleno = 59 (0x3b), region = 24 }
  0x12   : > { %s813_s25 = scalar_select %p680_p10, 1, 0 }
  0x18   : > { %137 = sbr.rel (!%p36_p5) target bundleno = 59 (0x3b), region = 28  ;;  %s138_s26 = sand.u32 (%p36_p5), 1, %s596_s16  }
  0x19   : > { %s373_s27 = sshll.u32 (%p36_p5), %s600_s17, 4  ;;  %s372_s28 = sshll.u32 (%p36_p5), %s138_s26, 7 }
  0x1a   : > { %s144_s29 = ssub.s32 (%p36_p5), 38, %s373_s27  ;;  %s690_s5 = scalar_lea.sflag (%p36_p5), [#allocation4], %s138_s26 }
  0x1b   : > { %p145_p12 = scmp.lt.s32.totalorder (%p36_p5), %s144_s29, 16  ;;  %s142_s6 = scalar_lea.vmem (%p36_p5), [#allocation3], %s372_s28 }
  0x1f   : > { %s820_s29 = smov (!%p145_p12, %s144_s29), 16 }
  0x20   : > { %s687_s30 = sshll.u32 %s820_s29, 7 }
  0x21   : > { %s149_s4 = ssub.s32 2048, %s687_s30 }
  0x22   : > { %150 = vsyncadd %s690_s5, %s149_s4  ;;  %p375_p13 = scmp.ne.s32.totalorder %s687_s30, 0  ;;  %s384_s7 = sshll.u32 %s600_s17, 11 }
  0x23   : > { %s698_s10 = scalar_lea.hbm %s807_s0, %s384_s7  ;;  %s155_s11 = sshll.u32 %s142_s6, 4  ;;  %s700_s11 = int_to_ptr.vmem [resolvable:$true] %s155_s11 }
  0x24   : > { %s506_s12 = scalar_lea.hbm %s698_s10, %s687_s30  ;;  %s510_s20 = scalar_lea.hbm %s807_s0, 4864 }
  0x25   : > { %p507_p0 = scmp.ne.s32.totalorder %s698_s10, %s506_s12  ;;  %p511_p3 = scmp.lt.u32.totalorder %s698_s10, %s807_s0 }
  0x26   : > { %p512_p4 = scmp.lt.u32.totalorder %s510_s20, %s506_s12  ;;  %p514_p7 = scmp.lt.u32.totalorder %s506_s12, %s698_s10 }
  0x27   : > { %p508_p1 = pnand %p507_p0, %p375_p13 }
  0x28   : > { %p513_p5 = por %p512_p4, %p511_p3 }
  0x29   : > { %p509_p2 = pneg %p508_p1 }
  0x2a   : > { %p515_p8 = por %p514_p7, %p513_p5 }
  0x2c   : > { %p516_p11 = pnand %p515_p8, %p509_p2 }
  0x2e   : > { %519 = shalt.err (!%p516_p11)
}
  0x2f   : > { %s520_s27 = scalar_lea.vmem %s700_s11, %s687_s30  ;;  %s602_s28 = smov [#allocation3]  }
  0x30   : > { %p521_p12 = scmp.ne.s32.totalorder %s700_s11, %s520_s27  ;;  %s524_s29 = sshll.u32 %s602_s28, 4  ;;  %s525_s29 = int_to_ptr.vmem [resolvable:$false] %s524_s29 }
  0x31   : > { %s526_s4 = scalar_lea.vmem %s525_s29, 4096  ;;  %p527_p10 = scmp.lt.s32.totalorder %s700_s11, %s525_s29 }
  0x32   : > { %p522_p0 = pnand %p521_p12, %p375_p13  ;;  %p528_p3 = scmp.lt.s32.totalorder %s526_s4, %s520_s27 }
  0x34   : > { %p523_p1 = pneg %p522_p0  ;;  %p529_p4 = por %p528_p3, %p527_p10 }
  0x36   : > { %p530_p5 = pnand %p529_p4, %p523_p1 }
  0x38   : > { %533 = shalt.err (!%p530_p5)
}
  0x39   : > { %s603_s6 = smov 128   ;;  %s604_s7 = smov 8  }
  0x3a   : > { %161 = dma.hbm_to_vmem [thread:$0]  (%p375_p13), %s698_s10, %s687_s30, %s700_s11, %s690_s5, %s603_s6, %s603_s6, %s604_s7  }
  0x3b PF: > { %p379_p2 = scmp.ge.s32.totalorder %s600_s17, 1  ;;  %p163_p7 = scmp.lt.s32.totalorder %s600_s17, 4 }
  0x3d   : > { %p164_p8 = pnand %p379_p2, %p163_p7 }
  0x3e   : > { %s730_s8 = sand.u32 (!%p164_p8), 1, %s592_s15  }
  0x3f   : > { %167 = sbr.rel (%p164_p8) target bundleno = 365 (0x16d), region = 32  ;;  %s380_s9 = sshll.u32 (!%p164_p8), %s730_s8, 7 }
  0x40   : > { %s170_s12 = scalar_lea.sflag (!%p164_p8), [#allocation4], %s730_s8  ;;  %s734_s13 = scalar_lea.vmem (!%p164_p8), [#allocation3], %s380_s9 }
  0x46   : > { %579 = dma.done.wait (%p671_p6), %s170_s12, 2048  }
  0x47   : > { %581 = vsyncadd (%p671_p6), %s170_s12, 4294965248  ;;  %v605_v0 = vmov 0.0|0.0   ;;  %vm606_vm0 = vmmov 0   ;;  %v607_v1 = vmov 0.0   ;;  %v201_v2 = vld [vmem:[%s734_s13] sm:$0xff]  ;;  %v202_v3 = vld [vmem:[%s734_s13 + $0x8] sm:$0xff] }
  0x48   : > { %437 = vmatprep.subr.bf16.mxu0 %v605_v0  ;;  %434 = vmatprep.mubr.msk.f32.mxu0 %vm606_vm0, %v607_v1  ;;  %v438_v4 = vpack.c.bf16 %v202_v3, %v201_v2  ;;  %v203_v5 = vld [vmem:[%s734_s13 + $0x10] sm:$0xff]  ;;  %v204_v6 = vld [vmem:[%s734_s13 + $0x18] sm:$0xff]  ;;  %v205_v8 = vld [vmem:[%s734_s13 + $0x20] sm:$0xff]  ;;  %s217_s5 = sld [smem:[#allocation2]]  ;;  %s381_s10 = sshll.u32 %s653_s2, 4 }
  0x49   : > { %v441_v7 = vpack.c.bf16 %v204_v6, %v203_v5  ;;  %v206_v9 = vld [vmem:[%s734_s13 + $0x28] sm:$0xff]  ;;  %v207_v11 = vld [vmem:[%s734_s13 + $0x30] sm:$0xff]  ;;  %v208_v12 = vld [vmem:[%s734_s13 + $0x38] sm:$0xff]  ;;  %s194_s11 = scalar_lea.vmem [#allocation6], %s730_s8  ;;  %s764_s26 = scalar_lea.hbm %s810_s3, %s381_s10 }
  0x4a   : > { %439 = vmatpush3.bf16.xpose.msra.mxu0 %v438_v4  ;;  %v444_v10 = vpack.c.bf16 %v206_v9, %v205_v8  ;;  %v447_v13 = vpack.c.bf16 %v208_v12, %v207_v11  ;;  %v209_v14 = vld [vmem:[%s734_s13 + $0x40] sm:$0xff]  ;;  %v210_v15 = vld [vmem:[%s734_s13 + $0x48] sm:$0xff]  ;;  %v211_v17 = vld [vmem:[%s734_s13 + $0x50] sm:$0xff]  ;;  %s303_s18 = sshll.u32 %s194_s11, 4  ;;  %s291_s27 = scalar_lea.sflag [#allocation5], %s730_s8  ;;  %s766_s18 = int_to_ptr.vmem [resolvable:$true] %s303_s18 }
  0x4b   : > { %440 = vmatprep.subr.bf16.mxu0 %v605_v0  ;;  %v450_v16 = vpack.c.bf16 %v210_v15, %v209_v14  ;;  %v212_v18 = vld [vmem:[%s734_s13 + $0x58] sm:$0xff]  ;;  %v213_v20 = vld [vmem:[%s734_s13 + $0x60] sm:$0xff]  ;;  %v214_v21 = vld [vmem:[%s734_s13 + $0x68] sm:$0xff]  ;;  %s534_s28 = scalar_lea.vmem %s766_s18, 16  ;;  %s608_s2 = smov [#allocation6]  }
  0x4c   : > { %v453_v19 = vpack.c.bf16 %v212_v18, %v211_v17  ;;  %v456_v22 = vpack.c.bf16 %v214_v21, %v213_v20  ;;  %v215_v23 = vld [vmem:[%s734_s13 + $0x70] sm:$0xff]  ;;  %v216_v24 = vld [vmem:[%s734_s13 + $0x78] sm:$0xff]  ;;  %v200_v26 = vld [vmem:[%s808_s1] sm:$0x1]  ;;  %p535_p6 = scmp.ne.s32.totalorder %s766_s18, %s534_s28  ;;  %s538_s29 = sshll.u32 %s608_s2, 4  ;;  %s539_s29 = int_to_ptr.vmem [resolvable:$false] %s538_s29 }
  0x4d   : > { %v459_v25 = vpack.c.bf16 %v216_v24, %v215_v23  ;;  %s540_s4 = scalar_lea.vmem %s539_s29, 32  ;;  %p541_p11 = scmp.lt.s32.totalorder %s766_s18, %s539_s29 }
  0x4e   : > { %v218_v27 = vstv %s217_s5  ;;  %p536_p10 = pnand %p535_p6, %p676_p9  ;;  %p542_p12 = scmp.lt.s32.totalorder %s540_s4, %s534_s28 }
  0x50   : > { %p537_p13 = pneg %p536_p10  ;;  %p543_p0 = por %p542_p12, %p541_p11 }
  0x52   : > { %442 = vmatpush3.bf16.xpose.msra.mxu0 %v441_v7  ;;  %p544_p1 = pnand %p543_p0, %p537_p13 }
  0x53   : > { %443 = vmatprep.subr.bf16.mxu0 %v605_v0 }
  0x5a   : > { %445 = vmatpush3.bf16.xpose.msra.mxu0 %v444_v10 }
  0x5b   : > { %446 = vmatprep.subr.bf16.mxu0 %v605_v0 }
  0x62   : > { %448 = vmatpush3.bf16.xpose.msra.mxu0 %v447_v13 }
  0x63   : > { %449 = vmatprep.subr.bf16.mxu0 %v605_v0 }
  0x6a   : > { %451 = vmatpush3.bf16.xpose.msra.mxu0 %v450_v16 }
  0x6b   : > { %452 = vmatprep.subr.bf16.mxu0 %v605_v0 }
  0x72   : > { %454 = vmatpush3.bf16.xpose.msra.mxu0 %v453_v19 }
  0x73   : > { %455 = vmatprep.subr.bf16.mxu0 %v605_v0 }
  0x7a   : > { %457 = vmatpush3.bf16.xpose.msra.mxu0 %v456_v22 }
  0x7b   : > { %458 = vmatprep.subr.bf16.mxu0 %v605_v0 }
  0x82   : > { %460 = vmatpush3.bf16.xpose.msra.mxu0 %v459_v25 }
  0x89   : > { %435 = vmatmul.mubr.f32.vlgmr.msra.gmra.mrb[0].mxu0 %v200_v26 }
 0x15c   : > { %v285_v28 = vpop.f32.mrb[0].mxu0 }
 0x15d   : > { %v286_v29 = vadd.f32 %v285_v28, %v218_v27  ;;  %v436_v30 = vpop.f32.mrb[1].mxu0 }
 0x15f   : > { %289 = vst [vmem:[%s194_s11] sm:$0x1] %v286_v29 }
 0x160   : > { %547 = shalt.err (!%p544_p1)
}
 0x161   : > { %s548_s6 = scalar_lea.hbm %s764_s26, 16  ;;  %s552_s9 = scalar_lea.hbm %s810_s3, 48 }
 0x162   : > { %p549_p3 = scmp.ne.s32.totalorder %s764_s26, %s548_s6  ;;  %p553_p2 = scmp.lt.u32.totalorder %s764_s26, %s810_s3 }
 0x163   : > { %p554_p7 = scmp.lt.u32.totalorder %s552_s9, %s548_s6  ;;  %p556_p6 = scmp.lt.u32.totalorder %s548_s6, %s764_s26 }
 0x164   : > { %p550_p4 = pnand %p549_p3, %p676_p9 }
 0x165   : > { %p555_p8 = por %p554_p7, %p553_p2 }
 0x166   : > { %p551_p5 = pneg %p550_p4 }
 0x167   : > { %p557_p10 = por %p556_p6, %p555_p8 }
 0x169   : > { %p558_p13 = pnand %p557_p10, %p551_p5 }
 0x16b   : > { %561 = shalt.err (!%p558_p13)
}
 0x16c   : > { %462 = dma.vmem_to_hbm [thread:$0]  (%p676_p9), %s766_s18, 16, %s764_s26, %s291_s27  }
 0x16d PF: > { %p468_p11 = scmp.ge.s32.totalorder %s600_s17, 2  ;;  %s315_s23 = sand.u32 1, %s588_s14  }
 0x16e   : > { %p814_p12 = scmp.ne.s32.totalorder %s813_s25, 0  ;;  %s316_s30 = scalar_lea.sflag [#allocation5], %s315_s23 }
 0x170   : > { %p465_p0 = pnand %p468_p11, %p814_p12 }
 0x172   : > { %583 = dma.done.wait (!%p465_p0), %s316_s30, 16  }
 0x173   : > { %585 = vsyncadd (!%p465_p0), %s316_s30, 4294967280  ;;  %p17_p1 = scmp.ge.s32.totalorder %s657_s19, 5   ;;  %s815_s14 = smov %s592_s15 }
 0x174   : > { %s816_s15 = smov %s596_s16  ;;  %s817_s16 = smov %s669_s22 }
 0x175   : > { %s818_s17 = smov %s657_s19  ;;  %19 = sbr.rel (!%p17_p1) target bundleno = 7 (0x7), region = 77 }
 0x17c   :  { %320 = vsyncpa [#allocation4], 1 }
 0x17d   :  { %322 = vsyncpa [#allocation4 + $0x1], 1 }
 0x17e   :  { %323 = vsyncpa [#allocation5], 1 }
 0x17f   :  { %325 = vsyncpa [#allocation5 + $0x1], 1 }

</bundles_post_ra>
